<compile_context>
chip_gen: v7x
topology: tpu7x:2x2x1
jax: 0.10.0
libtpu: 0.0.40
codegen_flags: <defaults>
</compile_context>

<pallas_src>
import functools

import jax
import jax.numpy as jnp
from jax.experimental import pallas as pl
from jax.experimental.pallas import tpu as pltpu

FEAT = 17  # RNN input == hidden size
OUT = 1    # fc output size


def _round_up(n, m):
    return ((n + m - 1) // m) * m


def narma_kernel(x_t_ref, w_ih_ref, bw_ref, b_fc_ref, out_ref):
    # x_t_ref : (FEAT, TB)   batch tile, features on sublanes / batch on lanes
    # w_ih_ref: (FEAT, FEAT) RNN input weights, native (out, in) layout
    # bw_ref  : (FEAT, 2)    col 0 = fused RNN bias (b_ih+b_hh), col 1 = fc weight
    # b_fc_ref: (1, 1)       fc bias scalar in SMEM
    # out_ref : (1, TB)      lane-dense output tile
    x_t = x_t_ref[...]
    b_fused = bw_ref[:, 0:1]   # (FEAT, 1)
    w_fc = bw_ref[:, 1:2]      # (FEAT, 1)

    # Single RNN (tanh) step with h0 == 0:
    #   h1^T = tanh(W_ih @ x^T + (b_ih + b_hh))
    h1_t = jnp.tanh(
        jnp.dot(w_ih_ref[...], x_t, preferred_element_type=jnp.float32)
        + b_fused
    )

    # fc layer as VPU mul + sublane reduce (avoids an N=1 MXU pass):
    #   y^T = sum_f w_fc[f] * h1^T[f, :] + b_fc   -> (1, TB)
    y_t = jnp.sum(h1_t * w_fc, axis=0, keepdims=True) + b_fc_ref[0, 0]
    out_ref[...] = y_t.astype(out_ref.dtype)


@functools.partial(jax.jit, static_argnames=("block_b",))
def narma_forward(x, w_ih, w_hh, b_ih, b_hh, w_fc, b_fc, *, block_b=65536):
    """x: (B, 17) -> (B, 1) float32."""
    B = x.shape[0]

    # Transposed, lane-dense layout: features on sublanes, batch on lanes.
    # Under jit the transpose + pad fuse into one copy.
    x_t = x.astype(jnp.float32).T  # (FEAT, B)

    # Host-side prep: fuse the two RNN biases, pack bias + fc weight column
    # into a single tiny replicated block, keep b_fc as an SMEM scalar.
    bw = jnp.stack(
        [(b_ih + b_hh).astype(jnp.float32),
         w_fc.reshape(FEAT).astype(jnp.float32)],
        axis=1,
    )  # (FEAT, 2)
    b_fc_s = b_fc.reshape(1, 1).astype(jnp.float32)
    w_ih_f = w_ih.astype(jnp.float32)

    # Pad the batch only to the 128-lane boundary (not to a full tile).
    b_pad = _round_up(B, 128)
    if b_pad != B:
        x_t = jnp.pad(x_t, ((0, 0), (0, b_pad - B)))

    # Batch tile: multiple of 128, capped by block_b (f32 default 65536 keeps
    # the double-buffered x tile ~12.6 MiB -> fits v7x's 64 MiB VMEM with
    # headroom while amortizing per-step overhead on v5e/v6e as well).
    tb = _round_up(min(block_b, b_pad), 128)
    # Prefer >=2 grid steps so the "parallel" axis can shard across both
    # TensorCores on v7x (no-op on single-TC v5e/v6e).
    if b_pad > 128:
        tb = min(tb, _round_up(pl.cdiv(b_pad, 2), 128))
    grid = (pl.cdiv(b_pad, tb),)  # trailing tile may be partial (masked)

    out_t = pl.pallas_call(
        narma_kernel,
        out_shape=jax.ShapeDtypeStruct((OUT, b_pad), jnp.float32),
        grid=grid,
        in_specs=[
            pl.BlockSpec((FEAT, tb), lambda i: (0, i)),       # x^T batch tile
            pl.BlockSpec((FEAT, FEAT), lambda i: (0, 0)),     # W_ih (replicated)
            pl.BlockSpec((FEAT, 2), lambda i: (0, 0)),        # [bias | w_fc]
            pl.BlockSpec((1, 1), lambda i: (0, 0),
                         memory_space=pltpu.MemorySpace.SMEM),  # b_fc scalar
        ],
        out_specs=pl.BlockSpec((OUT, tb), lambda i: (0, i)),
        compiler_params=pltpu.CompilerParams(
            dimension_semantics=("parallel",),
            vmem_limit_bytes=48 * 1024 * 1024,
        ),
    )(x_t, w_ih_f, bw, b_fc_s)

    # Back to the PyTorch (B, 1) shape.
    return out_t[:, :B].T


def init_params(key):
    """Deterministic synthetic params with the same shapes as the PyTorch module."""
    k1, k2, k3, k4, k5, k6 = jax.random.split(key, 6)
    bound = 1.0 / jnp.sqrt(jnp.float32(FEAT))
    w_ih = jax.random.uniform(k1, (FEAT, FEAT), jnp.float32, -bound, bound)
    w_hh = jax.random.uniform(k2, (FEAT, FEAT), jnp.float32, -bound, bound)
    b_ih = jax.random.uniform(k3, (FEAT,), jnp.float32, -bound, bound)
    b_hh = jax.random.uniform(k4, (FEAT,), jnp.float32, -bound, bound)
    w_fc = jax.random.uniform(k5, (OUT, FEAT), jnp.float32, -bound, bound)
    b_fc = jax.random.uniform(k6, (OUT,), jnp.float32, -bound, bound)
    return w_ih, w_hh, b_ih, b_hh, w_fc, b_fc


def reference_forward(x, w_ih, w_hh, b_ih, b_hh, w_fc, b_fc):
    """Pure-JAX reference matching the PyTorch forward."""
    h0 = jnp.zeros_like(x)
    h1 = jnp.tanh(x @ w_ih.T + b_ih + h0 @ w_hh.T + b_hh)
    return h1 @ w_fc.T + b_fc


if __name__ == "__main__":
    key = jax.random.PRNGKey(0)
    kx, kx2, kp = jax.random.split(key, 3)
    params = init_params(kp)

    # Primary small-shape check (B=8): single grid step.
    B = 8
    x = jax.random.normal(kx, (B, FEAT), jnp.float32)
    out = jax.block_until_ready(narma_forward(x, *params))
    ref = reference_forward(x, *params)
    assert out.shape == (B, OUT)
    assert jnp.allclose(out, ref, atol=1e-5, rtol=1e-5)

    # Secondary check (B=300): exercises multi-step grid + partial trailing tile.
    B2 = 300
    x2 = jax.random.normal(kx2, (B2, FEAT), jnp.float32)
    out2 = jax.block_until_ready(narma_forward(x2, *params))
    ref2 = reference_forward(x2, *params)
    assert out2.shape == (B2, OUT)
    assert jnp.allclose(out2, ref2, atol=1e-5, rtol=1e-5)

    print("KERNEL_OK")
</pallas_src>

<mosaic_0001>
module attributes {stable_mosaic.version = 11 : i64} {
  func.func @narma_kernel(%arg0: i32, %arg1: memref<17x128xf32, #tpu.memory_space<vmem>>, %arg2: memref<17x17xf32, #tpu.memory_space<vmem>>, %arg3: memref<17x2xf32, #tpu.memory_space<vmem>>, %arg4: memref<1x1xf32, #tpu.memory_space<smem>>, %arg5: memref<1x128xf32, #tpu.memory_space<vmem>>) attributes {dimension_semantics = [#tpu.dimension_semantics<parallel>], iteration_bounds = array<i64: 1>, scalar_prefetch = 0 : i64, scratch_operands = 0 : i64, tpu.core_type = #tpu.core_type<tc>, window_params = [{transform_indices = @transform_0, window_bounds = array<i64: 17, 128>}, {pipeline_mode = #tpu.pipeline_mode<synchronous>, transform_indices = @transform_1, window_bounds = array<i64: 17, 17>}, {pipeline_mode = #tpu.pipeline_mode<synchronous>, transform_indices = @transform_2, window_bounds = array<i64: 17, 2>}, {transform_indices = @transform_3, window_bounds = array<i64: 1, 1>}, {transform_indices = @transform_4, window_bounds = array<i64: 1, 128>}]} {
    %c0 = arith.constant 0 : index
    %c0_0 = arith.constant 0 : index
    %0 = vector.load %arg1[%c0, %c0_0] : memref<17x128xf32, #tpu.memory_space<vmem>>, vector<17x128xf32>
    %c0_1 = arith.constant 0 : index
    %c0_2 = arith.constant 0 : index
    %1 = vector.load %arg3[%c0_1, %c0_2] : memref<17x2xf32, #tpu.memory_space<vmem>>, vector<17x1xf32>
    %c0_3 = arith.constant 0 : index
    %c1 = arith.constant 1 : index
    %2 = vector.load %arg3[%c0_3, %c1] : memref<17x2xf32, #tpu.memory_space<vmem>>, vector<17x1xf32>
    %c0_4 = arith.constant 0 : index
    %c0_5 = arith.constant 0 : index
    %3 = vector.load %arg2[%c0_4, %c0_5] : memref<17x17xf32, #tpu.memory_space<vmem>>, vector<17x17xf32>
    %cst = arith.constant dense<0.000000e+00> : vector<17x128xf32>
    %4 = tpu.matmul %3, %0, %cst {dimension_numbers = #tpu.dot_dimension_numbers<[1], [0], [0], [1], [0, 0, 1, 1], [], []>} : vector<17x17xf32>, vector<17x128xf32>, vector<17x128xf32> -> vector<17x128xf32>
    %5 = vector.broadcast %1 : vector<17x1xf32> to vector<17x128xf32>
    %6 = arith.addf %4, %5 : vector<17x128xf32>
    %7 = math.tanh %6 : vector<17x128xf32>
    %8 = vector.broadcast %2 : vector<17x1xf32> to vector<17x128xf32>
    %9 = arith.mulf %7, %8 : vector<17x128xf32>
    %cst_6 = arith.constant dense<0.000000e+00> : vector<128xf32>
    %10 = vector.multi_reduction <add>, %9, %cst_6 [0] : vector<17x128xf32> to vector<128xf32>
    %11 = vector.shape_cast %10 : vector<128xf32> to vector<1x128xf32>
    %c0_7 = arith.constant 0 : index
    %c0_8 = arith.constant 0 : index
    %12 = memref.load %arg4[%c0_7, %c0_8] : memref<1x1xf32, #tpu.memory_space<smem>>
    %13 = vector.broadcast %12 : f32 to vector<1x128xf32>
    %14 = arith.addf %11, %13 : vector<1x128xf32>
    %c0_9 = arith.constant 0 : index
    %c0_10 = arith.constant 0 : index
    %15 = vector.load %arg5[%c0_9, %c0_10] : memref<1x128xf32, #tpu.memory_space<vmem>>, vector<1x128xf32>
    tpu.vector_store %arg5[%c0_9, %c0_10], %14 {strides = array<i32>} : memref<1x128xf32, #tpu.memory_space<vmem>>, vector<1x128xf32>,
    return
  }
  func.func @transform_0(%arg0: i32) -> (i32, i32) {
    %c0_i32 = arith.constant 0 : i32
    %c0_i32_0 = arith.constant 0 : i32
    return %c0_i32, %arg0 : i32, i32
  }
  func.func @transform_1(%arg0: i32) -> (i32, i32) {
    %c0_i32 = arith.constant 0 : i32
    %c0_i32_0 = arith.constant 0 : i32
    %c0_i32_1 = arith.constant 0 : i32
    return %c0_i32, %c0_i32_0 : i32, i32
  }
  func.func @transform_2(%arg0: i32) -> (i32, i32) {
    %c0_i32 = arith.constant 0 : i32
    %c0_i32_0 = arith.constant 0 : i32
    %c0_i32_1 = arith.constant 0 : i32
    return %c0_i32, %c0_i32_0 : i32, i32
  }
  func.func @transform_3(%arg0: i32) -> (i32, i32) {
    %c0_i32 = arith.constant 0 : i32
    %c0_i32_0 = arith.constant 0 : i32
    %c0_i32_1 = arith.constant 0 : i32
    return %c0_i32, %c0_i32_0 : i32, i32
  }
  func.func @transform_4(%arg0: i32) -> (i32, i32) {
    %c0_i32 = arith.constant 0 : i32
    %c0_i32_0 = arith.constant 0 : i32
    return %c0_i32, %arg0 : i32, i32
  }
}

</mosaic_0001>

<bundles_post_ra>
// kernel: narma_forward.1
= control target key start
LH: loop header
LB: loop body
LE: loop exit
PB: predicated region body
PF: predicated region fallthrough
CT: control target
= control target key end

     0   :  { %v218_v0 = vmov 0.0|0.0   ;;  %vm219_vm0 = vmmov 0   ;;  %v220_v4 = vmov 0.0   ;;  %v221_v5 = vmov 0   ;;  %s287_s0 = inlined_call_operand.vmem [shape: f32[17,128], index: 0, kind: input, shape index: {}]   ;;  %s288_s2 = inlined_call_operand.vmem [shape: f32[17,2], index: 2, kind: input, shape index: {}]   ;;  %s289_s1 = inlined_call_operand.vmem [shape: f32[17,17], index: 1, kind: input, shape index: {}]   ;;  %s290_s3 = inlined_call_operand.<no memory space> [shape: f32[1,1], index: 3, kind: input, shape index: {}]   ;;  %s291_s4 = inlined_call_operand.vmem [shape: f32[1,128], index: 4, kind: output, shape index: {}]  }
   0x1   :  { %196 = vmatprep.subr.bf16.mxu0 %v218_v0  ;;  %199 = vmatprep.subr.bf16.mxu1 %v218_v0  ;;  %v18_v1 = vld [vmem:[%s287_s0] sm:$0xff]  ;;  %v19_v2 = vld [vmem:[%s287_s0 + $0x8] sm:$0xff]  ;;  %v23_v7 = vld [vmem:[%s288_s2 + $0x10] sm:$0x1]  ;;  %vm52_vm1 = vcmask 1040384   ;;  %vm42_vm2 = vcmask 138240   ;;  %v164_v43 = vstv %s290_s3 }
   0x2   :  { %v197_v3 = vpack.c.bf16 %v19_v2, %v18_v1  ;;  %187 = vmatprep.mubr.msk.f32.mxu0 %vm219_vm0, %v220_v4  ;;  %190 = vmatprep.mubr.msk.f32.mxu1 %vm219_vm0, %v220_v4  ;;  %v21_v6 = vld [vmem:[%s288_s2] sm:$0xff]  ;;  %v20_v8 = vld [vmem:[%s287_s0 + $0x10] sm:$0x1]  ;;  %v25_v10 = vld [vmem:[%s289_s1 + $0x8] sm:$0xff]  ;;  %v222_v13 = vmov 1  }
   0x3   :  { %208 = vset.pattern.permute.xlu0 %v221_v5  ;;  %209 = vset.pattern.permute.xlu1 %v221_v5  ;;  %v24_v9 = vld [vmem:[%s289_s1] sm:$0xff]  ;;  %v22_v11 = vld [vmem:[%s288_s2 + $0x8] sm:$0xff]  ;;  %v26_v12 = vld [vmem:[%s289_s1 + $0x10] sm:$0x1] }
   0x4   :  { %198 = vmatpush3.bf16.msra.mxu0 %v197_v3  ;;  %201 = vmatpush3.bf16.msra.mxu1 %v197_v3 }
   0x5   :  { %185 = vmatprep.subr.mxu0 %v220_v4  ;;  %200 = vmatprep.subr.mxu1 %v220_v4 }
   0x6   :  { %29 = vperm.xlu0 %208, %v21_v6   ;;  %39 = vperm.xlu1 %209, %v23_v7  }
   0x8   :  { %186 = vmatpush3.msk.msra.mxu0 %vm52_vm1, %v20_v8  ;;  %202 = vmatpush3.msk.msra.mxu1 %vm52_vm1, %v20_v8 }
   0x9   :  { %188 = vmatmul.mubr.msk.f32.vlgmr.msra.gmra.mrb[0].mxu0 %vm42_vm2, %v24_v9  ;;  %191 = vmatmul.mubr.msk.f32.vlgmr.msra.gmra.mrb[0].mxu1 %vm42_vm2, %v25_v10 }
   0xa   :  { %193 = vmatprep.mubr.msk.f32.mxu1 %vm219_vm0, %v220_v4  ;;  %34 = vperm.xlu0 %208, %v22_v11  }
   0xb   :  { %210 = vset.pattern.permute.xlu1 %v222_v13 }
   0xc   :  { %140 = vperm.xlu1 %210, %v21_v6  }
   0xd   :  { %194 = vmatmul.mubr.msk.f32.gmra.mrb[2].mxu1 %vm42_vm2, %v26_v12 }
   0xe   :  { %211 = vset.pattern.permute.xlu0 %v222_v13 }
   0xf   :  { %144 = vperm.xlu0 %211, %v22_v11  }
  0x10   :  { %148 = vperm.xlu1 %210, %v23_v7  }
  0x85   :  { %v30_v14 = vpop.permute.xlu0 %29  ;;  %v40_v22 = vpop.permute.xlu1 %39 }
  0x89   :  { %v35_v15 = vpop.permute.xlu0 %34 }
  0x8b   :  { %v141_v26 = vpop.permute.xlu1 %140 }
  0x8e   :  { %v145_v27 = vpop.permute.xlu0 %144 }
  0x8f   :  { %v149_v33 = vpop.permute.xlu1 %148 }
  0xdc   :  { %v122_v16 = vpop.f32.mrb[0].mxu0  ;;  %v127_v17 = vpop.f32.mrb[0].mxu1 }
  0xdd   :  { %v123_v18 = vadd.f32 %v122_v16, %v30_v14  ;;  %v128_v19 = vadd.f32 %v127_v17, %v35_v15  ;;  %v192_v20 = vpop.f32.mrb[1].mxu1  ;;  %v189_v21 = vpop.f32.mrb[1].mxu0 }
  0xdf   :  { %212 = vtanh.f32 %v123_v18 }
  0xe0   :  { %214 = vtanh.f32 %v128_v19  ;;  %v132_v23 = vpop.f32.mrb[2].mxu1 }
  0xe1   :  { %v133_v24 = vadd.f32 %v132_v23, %v40_v22  ;;  %v195_v25 = vpop.f32.mrb[3].mxu1 }
  0xe3   :  { %216 = vtanh.f32 %v133_v24 }
  0xe9   :  { %v213_v28 = vpop.eup %212 }
  0xea   :  { %v215_v29 = vpop.eup %214  ;;  %v151_v30 = vmul.f32 %v213_v28, %v141_v26 }
  0xeb   :  { %v152_v31 = vmul.f32 %v215_v29, %v145_v27 }
  0xed   :  { %v217_v32 = vpop.eup %216  ;;  %v154_v34 = vadd.f32 %v152_v31, %v151_v30 }
  0xee   :  { %v153_v35 = vmul.f32 %v217_v32, %v149_v33 }
  0xf0   :  { %v155_v36 = vsel %vm52_vm1, %v153_v35, 0.0 }
  0xf1   :  { %v156_v37 = vadd.f32 %v155_v36, %v154_v34 }
  0xf3   :  { %v157_v38 = vrot.slane %v156_v37, 4 }
  0xf5   :  { %v158_v39 = vadd.f32 %v157_v38, %v156_v37 }
  0xf7   :  { %v159_v40 = vrot.slane %v158_v39, 2 }
  0xf9   :  { %v160_v41 = vadd.f32 %v159_v40, %v158_v39 }
  0xfb   :  { %v161_v42 = vrot.slane %v160_v41, 1 }
  0xfd   :  { %v162_v44 = vadd.f32 %v161_v42, %v160_v41 }
  0xff   :  { %v165_v45 = vadd.f32 %v164_v43, %v162_v44 }
 0x101   :  { %166 = vst [vmem:[%s291_s4] sm:$0x1] %v165_v45 }

</bundles_post_ra>
